<compile_context>
chip_gen: v7x
topology: tpu7x:2x2x1
jax: 0.10.0
libtpu: 0.0.40
codegen_flags: <defaults>
</compile_context>

<pallas_src>
import functools

import jax
import jax.numpy as jnp
from jax import lax
from jax.experimental import pallas as pl
from jax.experimental.pallas import tpu as pltpu


def _transition_mlp_kernel(
    state_ref,   # (TB, D)  f32
    action_ref,  # (TB, 1)  i32
    w1s_ref,     # (D, H)   bf16  -- rows of W1 for the state part
    w1a_ref,     # (A, H)   bf16  -- rows of W1 for the one-hot action part
    w2_ref,      # (H, H)   bf16
    w3_ref,      # (H, D)   bf16
    vecs_ref,    # (4, H)   f32   -- [b1; b2; gamma; beta]
    b3_ref,      # (1, D)   f32
    out_ref,     # (TB, D)  f32
    *,
    action_dim: int,
):
    state = state_ref[...]                          # (TB, D) f32
    action = action_ref[...]                        # (TB, 1) i32
    tb = state.shape[0]
    h = vecs_ref.shape[1]

    vecs = vecs_ref[...]
    b1, b2 = vecs[0:1, :], vecs[1:2, :]
    gamma, beta = vecs[2:3, :], vecs[3:4, :]

    # one-hot(action) via iota compare (replaces torch scatter_); no lane
    # concat — the action contribution is a second tiny matmul on the idle MXU.
    lane_ids = lax.broadcasted_iota(jnp.int32, (tb, action_dim), 1)
    onehot = (lane_ids == action).astype(jnp.bfloat16)

    # Linear 1 (split) + ReLU — bf16 MXU inputs, f32 accumulation.
    h1 = jnp.dot(state.astype(jnp.bfloat16), w1s_ref[...],
                 preferred_element_type=jnp.float32)
    h1 = h1 + jnp.dot(onehot, w1a_ref[...], preferred_element_type=jnp.float32)
    h1 = jnp.maximum(h1 + b1, 0.0)

    # Linear 2
    h2 = jnp.dot(h1.astype(jnp.bfloat16), w2_ref[...],
                 preferred_element_type=jnp.float32) + b2

    # LayerNorm (eps=1e-5), single-pass statistics: var = E[x^2] - mean^2.
    # Kept in f32 with lax.rsqrt (EUP) — required for v5e (no bf16 VPU/EUP).
    inv_h = 1.0 / float(h)
    mean = jnp.sum(h2, axis=-1, keepdims=True) * inv_h
    ex2 = jnp.sum(h2 * h2, axis=-1, keepdims=True) * inv_h
    var = ex2 - mean * mean
    h2n = (h2 - mean) * lax.rsqrt(var + 1e-5) * gamma + beta

    # ReLU + Linear 3
    h3 = jnp.maximum(h2n, 0.0)
    out = jnp.dot(h3.astype(jnp.bfloat16), w3_ref[...],
                  preferred_element_type=jnp.float32) + b3_ref[...]
    # TODO(synk): out last dim D=16 < 128 lanes -> masked partial store. The
    # review's lane-dense (tb*D/128, 128) relayout needs an in-kernel
    # sublane->lane shuffle (XLU cost); only add it if a bundle dump after the
    # tile-size fix shows the store path binding, or fuse the consumer instead.
    out_ref[...] = out.astype(out_ref.dtype)


def _choose_batch_tile(B: int, block_b: int):
    """Pick (tile_rows, padded_batch) for the 1-D batch grid.

    Perf-review goals: (a) big tiles to amortize ~0.35us/grid-step overhead,
    (b) >= 2 grid steps whenever B >= 16 so v7x's second TensorCore gets work
    via the "parallel" batch axis, (c) no wrapper-side padding on the common
    path (tile divides B and is a multiple of 8).
    """
    block_b = max(8, int(block_b))
    if B <= 8:
        return B, B                       # single tiny step; nothing to shard
    # Largest multiple-of-8 tile that divides B, fits block_b and leaves >= 2
    # grid steps -> pipelined DMAs, both v7x TCs busy, zero padding.
    limit = min(block_b, B // 2)
    for cand in range(limit - limit % 8, 7, -8):
        if B % cand == 0:
            return cand, B
    # Rare fallback: B has no multiple-of-8 divisor <= block_b -> pad batch.
    tb = max(8, min(block_b, ((pl.cdiv(B, 2) + 7) // 8) * 8))
    bp = pl.cdiv(B, tb) * tb
    return tb, bp


def prepare_params(params, input_dim: int, action_dim: int):
    """One-time weight preprocessing, hoisted out of the forward hot path.

    Splits W1 into state/action parts, casts matmul weights to bf16 (halves
    weight DMA, MXU-native on v6e/v7x) and packs the four (1, H) vectors into
    a single (4, H) operand. Call this ONCE and reuse the result per forward.
    """
    D, A = input_dim, action_dim
    w1 = params["w1"]
    return dict(
        w1s=w1[:D].astype(jnp.bfloat16),
        w1a=w1[D:D + A].astype(jnp.bfloat16),
        w2=params["w2"].astype(jnp.bfloat16),
        w3=params["w3"].astype(jnp.bfloat16),
        vecs=jnp.concatenate([params["b1"], params["b2"],
                              params["gamma"], params["beta"]], axis=0),
        b3=params["b3"],
    )


def transition_mlp_forward(state, action, prepared, *, action_dim: int,
                           block_b: int = 4096):
    """state: (B, input_dim) f32; action: (B,) int; prepared = prepare_params(...)."""
    B, D = state.shape
    w1s, w1a = prepared["w1s"], prepared["w1a"]
    w2, w3 = prepared["w2"], prepared["w3"]
    vecs, b3 = prepared["vecs"], prepared["b3"]
    H = w2.shape[1]
    A = action_dim
    assert w1s.shape[0] == D and w1a.shape[0] == A

    tb, bp = _choose_batch_tile(B, block_b)

    state_f32 = state.astype(jnp.float32)
    action_2d = action.astype(jnp.int32).reshape(B, 1)
    if bp != B:
        # Rare fallback only (common path is pad-free per the perf review).
        state_f32 = jnp.pad(state_f32, ((0, bp - B), (0, 0)))
        action_2d = jnp.pad(action_2d, ((0, bp - B), (0, 0)))

    kernel = functools.partial(_transition_mlp_kernel, action_dim=A)
    out = pl.pallas_call(
        kernel,
        out_shape=jax.ShapeDtypeStruct((bp, D), jnp.float32),
        grid_spec=pltpu.PrefetchScalarGridSpec(
            num_scalar_prefetch=0,
            grid=(bp // tb,),
            in_specs=[
                pl.BlockSpec((tb, D), lambda i: (i, 0)),   # state
                pl.BlockSpec((tb, 1), lambda i: (i, 0)),   # action
                pl.BlockSpec((D, H), lambda i: (0, 0)),    # W1_state  (DMA once)
                pl.BlockSpec((A, H), lambda i: (0, 0)),    # W1_action (DMA once)
                pl.BlockSpec((H, H), lambda i: (0, 0)),    # W2        (DMA once)
                pl.BlockSpec((H, D), lambda i: (0, 0)),    # W3        (DMA once)
                pl.BlockSpec((4, H), lambda i: (0, 0)),    # [b1;b2;gamma;beta]
                pl.BlockSpec((1, D), lambda i: (0, 0)),    # b3
            ],
            out_specs=pl.BlockSpec((tb, D), lambda i: (i, 0)),
        ),
        compiler_params=pltpu.CompilerParams(
            dimension_semantics=("parallel",)),
    )(state_f32, action_2d, w1s, w1a, w2, w3, vecs, b3)

    return out[:B] if bp != B else out


def init_params(key, input_dim, hidden_dim, action_dim):
    """Deterministic synthetic parameters (PyTorch-like init, stored (in, out))."""
    ks = jax.random.split(key, 6)
    in1 = input_dim + action_dim

    def lin(kw, kb, fan_in, fan_out):
        bound = 1.0 / jnp.sqrt(fan_in)
        w = jax.random.uniform(kw, (fan_in, fan_out), jnp.float32, -bound, bound)
        b = jax.random.uniform(kb, (1, fan_out), jnp.float32, -bound, bound)
        return w, b

    w1, b1 = lin(ks[0], ks[1], in1, hidden_dim)
    w2, b2 = lin(ks[2], ks[3], hidden_dim, hidden_dim)
    w3, b3 = lin(ks[4], ks[5], hidden_dim, input_dim)
    return dict(
        w1=w1, b1=b1,
        w2=w2, b2=b2,
        gamma=jnp.ones((1, hidden_dim), jnp.float32),   # nn.LayerNorm defaults
        beta=jnp.zeros((1, hidden_dim), jnp.float32),
        w3=w3, b3=b3,
    )


def _reference_forward_f32(state, action, params, action_dim):
    """Pure-JAX f32 reference (exact module semantics)."""
    onehot = jax.nn.one_hot(action, action_dim, dtype=jnp.float32)
    sa = jnp.concatenate([state, onehot], axis=-1)
    h1 = jnp.maximum(sa @ params["w1"] + params["b1"], 0.0)
    h2 = h1 @ params["w2"] + params["b2"]
    mean = h2.mean(-1, keepdims=True)
    var = ((h2 - mean) ** 2).mean(-1, keepdims=True)
    h2n = (h2 - mean) * lax.rsqrt(var + 1e-5) * params["gamma"] + params["beta"]
    h3 = jnp.maximum(h2n, 0.0)
    return h3 @ params["w3"] + params["b3"]


def _reference_forward_bf16(state, action, params, action_dim):
    """Pure-JAX reference mirroring the kernel's bf16-in / f32-accumulate policy."""
    bf = jnp.bfloat16

    def dot(a, b):
        return jnp.dot(a.astype(bf), b.astype(bf),
                       preferred_element_type=jnp.float32)

    D = state.shape[1]
    onehot = jax.nn.one_hot(action, action_dim, dtype=jnp.float32)
    w1s, w1a = params["w1"][:D], params["w1"][D:]
    h1 = jnp.maximum(dot(state, w1s) + dot(onehot, w1a) + params["b1"], 0.0)
    h2 = dot(h1, params["w2"]) + params["b2"]
    mean = h2.mean(-1, keepdims=True)
    var = (h2 * h2).mean(-1, keepdims=True) - mean * mean
    h2n = (h2 - mean) * lax.rsqrt(var + 1e-5) * params["gamma"] + params["beta"]
    h3 = jnp.maximum(h2n, 0.0)
    return dot(h3, params["w3"]) + params["b3"]


if __name__ == "__main__":
    B, INPUT_DIM, HIDDEN_DIM, ACTION_DIM = 64, 16, 32, 4

    key = jax.random.PRNGKey(0)
    k_state, k_action, k_params = jax.random.split(key, 3)

    state = jax.random.normal(k_state, (B, INPUT_DIM), jnp.float32)
    action = jax.random.randint(k_action, (B,), 0, ACTION_DIM, jnp.int32)
    params = init_params(k_params, INPUT_DIM, HIDDEN_DIM, ACTION_DIM)

    # Weight preprocessing hoisted out of the hot path: done ONCE here.
    prepared = prepare_params(params, INPUT_DIM, ACTION_DIM)

    # Jitted forward; at B=64 the tile chooser picks tb=32 -> 2 "parallel"
    # grid steps (both v7x TensorCores busy) with no wrapper-side padding.
    fwd = jax.jit(functools.partial(transition_mlp_forward,
                                    action_dim=ACTION_DIM))
    out = jax.block_until_ready(fwd(state, action, prepared))

    ref_bf16 = _reference_forward_bf16(state, action, params, ACTION_DIM)
    ref_f32 = _reference_forward_f32(state, action, params, ACTION_DIM)

    assert out.shape == (B, INPUT_DIM)
    # tight check against a reference with the same bf16 matmul-input policy
    assert jnp.allclose(out, ref_bf16, atol=2e-3, rtol=2e-3), \
        float(jnp.max(jnp.abs(out - ref_bf16)))
    # loose check against the exact f32 module semantics
    assert jnp.allclose(out, ref_f32, atol=5e-2, rtol=5e-2), \
        float(jnp.max(jnp.abs(out - ref_f32)))

    # Ragged-batch sanity check (B=20 exercises the rare pad fallback path).
    B2 = 20
    out2 = jax.block_until_ready(
        transition_mlp_forward(state[:B2], action[:B2], prepared,
                               action_dim=ACTION_DIM))
    ref2 = _reference_forward_bf16(state[:B2], action[:B2], params, ACTION_DIM)
    assert out2.shape == (B2, INPUT_DIM)
    assert jnp.allclose(out2, ref2, atol=2e-3, rtol=2e-3), \
        float(jnp.max(jnp.abs(out2 - ref2)))

    print("KERNEL_OK")
</pallas_src>

<mosaic_0001>
module attributes {stable_mosaic.version = 11 : i64} {
  func.func @_transition_mlp_kernel(%arg0: i32, %arg1: memref<32x16xf32, #tpu.memory_space<vmem>>, %arg2: memref<32x1xi32, #tpu.memory_space<vmem>>, %arg3: memref<16x32xbf16, #tpu.memory_space<vmem>>, %arg4: memref<4x32xbf16, #tpu.memory_space<vmem>>, %arg5: memref<32x32xbf16, #tpu.memory_space<vmem>>, %arg6: memref<32x16xbf16, #tpu.memory_space<vmem>>, %arg7: memref<4x32xf32, #tpu.memory_space<vmem>>, %arg8: memref<1x16xf32, #tpu.memory_space<vmem>>, %arg9: memref<32x16xf32, #tpu.memory_space<vmem>>) attributes {dimension_semantics = [#tpu.dimension_semantics<parallel>], iteration_bounds = array<i64: 2>, scalar_prefetch = 0 : i64, scratch_operands = 0 : i64, tpu.core_type = #tpu.core_type<tc>, window_params = [{transform_indices = @transform_0, window_bounds = array<i64: 32, 16>}, {transform_indices = @transform_1, window_bounds = array<i64: 32, 1>}, {pipeline_mode = #tpu.pipeline_mode<synchronous>, transform_indices = @transform_2, window_bounds = array<i64: 16, 32>}, {pipeline_mode = #tpu.pipeline_mode<synchronous>, transform_indices = @transform_3, window_bounds = array<i64: 4, 32>}, {pipeline_mode = #tpu.pipeline_mode<synchronous>, transform_indices = @transform_4, window_bounds = array<i64: 32, 32>}, {pipeline_mode = #tpu.pipeline_mode<synchronous>, transform_indices = @transform_5, window_bounds = array<i64: 32, 16>}, {pipeline_mode = #tpu.pipeline_mode<synchronous>, transform_indices = @transform_6, window_bounds = array<i64: 4, 32>}, {pipeline_mode = #tpu.pipeline_mode<synchronous>, transform_indices = @transform_7, window_bounds = array<i64: 1, 16>}, {transform_indices = @transform_8, window_bounds = array<i64: 32, 16>}]} {
    %c0 = arith.constant 0 : index
    %c0_0 = arith.constant 0 : index
    %0 = vector.load %arg1[%c0, %c0_0] : memref<32x16xf32, #tpu.memory_space<vmem>>, vector<32x16xf32>
    %c0_1 = arith.constant 0 : index
    %c0_2 = arith.constant 0 : index
    %1 = vector.load %arg2[%c0_1, %c0_2] : memref<32x1xi32, #tpu.memory_space<vmem>>, vector<32x1xi32>
    %c0_3 = arith.constant 0 : index
    %c0_4 = arith.constant 0 : index
    %2 = vector.load %arg7[%c0_3, %c0_4] : memref<4x32xf32, #tpu.memory_space<vmem>>, vector<4x32xf32>
    %3 = vector.extract_strided_slice %2 {offsets = [0, 0], sizes = [1, 32], strides = [1, 1]} : vector<4x32xf32> to vector<1x32xf32>
    %4 = vector.extract_strided_slice %2 {offsets = [1, 0], sizes = [1, 32], strides = [1, 1]} : vector<4x32xf32> to vector<1x32xf32>
    %5 = vector.extract_strided_slice %2 {offsets = [2, 0], sizes = [1, 32], strides = [1, 1]} : vector<4x32xf32> to vector<1x32xf32>
    %6 = vector.extract_strided_slice %2 {offsets = [3, 0], sizes = [1, 32], strides = [1, 1]} : vector<4x32xf32> to vector<1x32xf32>
    %7 = tpu.iota {dimensions = array<i32: 1>} : vector<32x4xi32>
    %8 = vector.broadcast %1 : vector<32x1xi32> to vector<32x4xi32>
    %9 = arith.cmpi eq, %7, %8 : vector<32x4xi32>
    %10 = arith.extui %9 : vector<32x4xi1> to vector<32x4xi32>
    %11 = arith.sitofp %10 : vector<32x4xi32> to vector<32x4xf32>
    %12 = arith.truncf %11 : vector<32x4xf32> to vector<32x4xbf16>
    %13 = arith.truncf %0 : vector<32x16xf32> to vector<32x16xbf16>
    %c0_5 = arith.constant 0 : index
    %c0_6 = arith.constant 0 : index
    %14 = vector.load %arg3[%c0_5, %c0_6] : memref<16x32xbf16, #tpu.memory_space<vmem>>, vector<16x32xbf16>
    %cst = arith.constant dense<0.000000e+00> : vector<32x32xf32>
    %15 = tpu.matmul %13, %14, %cst {dimension_numbers = #tpu.dot_dimension_numbers<[1], [0], [0], [1], [0, 0, 1, 1], [], []>} : vector<32x16xbf16>, vector<16x32xbf16>, vector<32x32xf32> -> vector<32x32xf32>
    %c0_7 = arith.constant 0 : index
    %c0_8 = arith.constant 0 : index
    %16 = vector.load %arg4[%c0_7, %c0_8] : memref<4x32xbf16, #tpu.memory_space<vmem>>, vector<4x32xbf16>
    %cst_9 = arith.constant dense<0.000000e+00> : vector<32x32xf32>
    %17 = tpu.matmul %12, %16, %cst_9 {dimension_numbers = #tpu.dot_dimension_numbers<[1], [0], [0], [1], [0, 0, 1, 1], [], []>} : vector<32x4xbf16>, vector<4x32xbf16>, vector<32x32xf32> -> vector<32x32xf32>
    %18 = arith.addf %15, %17 : vector<32x32xf32>
    %19 = vector.broadcast %3 : vector<1x32xf32> to vector<32x32xf32>
    %20 = arith.addf %18, %19 : vector<32x32xf32>
    %cst_10 = arith.constant 0.000000e+00 : f32
    %21 = vector.broadcast %cst_10 : f32 to vector<32x32xf32>
    %22 = arith.maximumf %20, %21 : vector<32x32xf32>
    %23 = arith.truncf %22 : vector<32x32xf32> to vector<32x32xbf16>
    %c0_11 = arith.constant 0 : index
    %c0_12 = arith.constant 0 : index
    %24 = vector.load %arg5[%c0_11, %c0_12] : memref<32x32xbf16, #tpu.memory_space<vmem>>, vector<32x32xbf16>
    %cst_13 = arith.constant dense<0.000000e+00> : vector<32x32xf32>
    %25 = tpu.matmul %23, %24, %cst_13 {dimension_numbers = #tpu.dot_dimension_numbers<[1], [0], [0], [1], [0, 0, 1, 1], [], []>} : vector<32x32xbf16>, vector<32x32xbf16>, vector<32x32xf32> -> vector<32x32xf32>
    %26 = vector.broadcast %4 : vector<1x32xf32> to vector<32x32xf32>
    %27 = arith.addf %25, %26 : vector<32x32xf32>
    %cst_14 = arith.constant dense<0.000000e+00> : vector<32xf32>
    %28 = vector.multi_reduction <add>, %27, %cst_14 [1] : vector<32x32xf32> to vector<32xf32>
    %29 = vector.shape_cast %28 : vector<32xf32> to vector<32x1xf32>
    %cst_15 = arith.constant 3.125000e-02 : f32
    %30 = vector.broadcast %cst_15 : f32 to vector<32x1xf32>
    %31 = arith.mulf %29, %30 : vector<32x1xf32>
    %32 = arith.mulf %27, %27 : vector<32x32xf32>
    %cst_16 = arith.constant dense<0.000000e+00> : vector<32xf32>
    %33 = vector.multi_reduction <add>, %32, %cst_16 [1] : vector<32x32xf32> to vector<32xf32>
    %34 = vector.shape_cast %33 : vector<32xf32> to vector<32x1xf32>
    %cst_17 = arith.constant 3.125000e-02 : f32
    %35 = vector.broadcast %cst_17 : f32 to vector<32x1xf32>
    %36 = arith.mulf %34, %35 : vector<32x1xf32>
    %37 = arith.mulf %31, %31 : vector<32x1xf32>
    %38 = arith.subf %36, %37 : vector<32x1xf32>
    %39 = vector.broadcast %31 : vector<32x1xf32> to vector<32x32xf32>
    %40 = arith.subf %27, %39 : vector<32x32xf32>
    %cst_18 = arith.constant 9.99999974E-6 : f32
    %41 = vector.broadcast %cst_18 : f32 to vector<32x1xf32>
    %42 = arith.addf %38, %41 : vector<32x1xf32>
    %43 = math.rsqrt %42 : vector<32x1xf32>
    %44 = vector.broadcast %43 : vector<32x1xf32> to vector<32x32xf32>
    %45 = arith.mulf %40, %44 : vector<32x32xf32>
    %46 = vector.broadcast %5 : vector<1x32xf32> to vector<32x32xf32>
    %47 = arith.mulf %45, %46 : vector<32x32xf32>
    %48 = vector.broadcast %6 : vector<1x32xf32> to vector<32x32xf32>
    %49 = arith.addf %47, %48 : vector<32x32xf32>
    %cst_19 = arith.constant 0.000000e+00 : f32
    %50 = vector.broadcast %cst_19 : f32 to vector<32x32xf32>
    %51 = arith.maximumf %49, %50 : vector<32x32xf32>
    %52 = arith.truncf %51 : vector<32x32xf32> to vector<32x32xbf16>
    %c0_20 = arith.constant 0 : index
    %c0_21 = arith.constant 0 : index
    %53 = vector.load %arg6[%c0_20, %c0_21] : memref<32x16xbf16, #tpu.memory_space<vmem>>, vector<32x16xbf16>
    %cst_22 = arith.constant dense<0.000000e+00> : vector<32x16xf32>
    %54 = tpu.matmul %52, %53, %cst_22 {dimension_numbers = #tpu.dot_dimension_numbers<[1], [0], [0], [1], [0, 0, 1, 1], [], []>} : vector<32x32xbf16>, vector<32x16xbf16>, vector<32x16xf32> -> vector<32x16xf32>
    %c0_23 = arith.constant 0 : index
    %c0_24 = arith.constant 0 : index
    %55 = vector.load %arg8[%c0_23, %c0_24] : memref<1x16xf32, #tpu.memory_space<vmem>>, vector<1x16xf32>
    %56 = vector.broadcast %55 : vector<1x16xf32> to vector<32x16xf32>
    %57 = arith.addf %54, %56 : vector<32x16xf32>
    %c0_25 = arith.constant 0 : index
    %c0_26 = arith.constant 0 : index
    %58 = vector.load %arg9[%c0_25, %c0_26] : memref<32x16xf32, #tpu.memory_space<vmem>>, vector<32x16xf32>
    tpu.vector_store %arg9[%c0_25, %c0_26], %57 {strides = array<i32>} : memref<32x16xf32, #tpu.memory_space<vmem>>, vector<32x16xf32>,
    return
  }
  func.func @transform_0(%arg0: i32) -> (i32, i32) {
    %c0_i32 = arith.constant 0 : i32
    %c0_i32_0 = arith.constant 0 : i32
    return %arg0, %c0_i32 : i32, i32
  }
  func.func @transform_1(%arg0: i32) -> (i32, i32) {
    %c0_i32 = arith.constant 0 : i32
    %c0_i32_0 = arith.constant 0 : i32
    return %arg0, %c0_i32 : i32, i32
  }
  func.func @transform_2(%arg0: i32) -> (i32, i32) {
    %c0_i32 = arith.constant 0 : i32
    %c0_i32_0 = arith.constant 0 : i32
    %c0_i32_1 = arith.constant 0 : i32
    return %c0_i32, %c0_i32_0 : i32, i32
  }
  func.func @transform_3(%arg0: i32) -> (i32, i32) {
    %c0_i32 = arith.constant 0 : i32
    %c0_i32_0 = arith.constant 0 : i32
    %c0_i32_1 = arith.constant 0 : i32
    return %c0_i32, %c0_i32_0 : i32, i32
  }
  func.func @transform_4(%arg0: i32) -> (i32, i32) {
    %c0_i32 = arith.constant 0 : i32
    %c0_i32_0 = arith.constant 0 : i32
    %c0_i32_1 = arith.constant 0 : i32
    return %c0_i32, %c0_i32_0 : i32, i32
  }
  func.func @transform_5(%arg0: i32) -> (i32, i32) {
    %c0_i32 = arith.constant 0 : i32
    %c0_i32_0 = arith.constant 0 : i32
    %c0_i32_1 = arith.constant 0 : i32
    return %c0_i32, %c0_i32_0 : i32, i32
  }
  func.func @transform_6(%arg0: i32) -> (i32, i32) {
    %c0_i32 = arith.constant 0 : i32
    %c0_i32_0 = arith.constant 0 : i32
    %c0_i32_1 = arith.constant 0 : i32
    return %c0_i32, %c0_i32_0 : i32, i32
  }
  func.func @transform_7(%arg0: i32) -> (i32, i32) {
    %c0_i32 = arith.constant 0 : i32
    %c0_i32_0 = arith.constant 0 : i32
    %c0_i32_1 = arith.constant 0 : i32
    return %c0_i32, %c0_i32_0 : i32, i32
  }
  func.func @transform_8(%arg0: i32) -> (i32, i32) {
    %c0_i32 = arith.constant 0 : i32
    %c0_i32_0 = arith.constant 0 : i32
    return %arg0, %c0_i32 : i32, i32
  }
}

</mosaic_0001>

<bundles_post_ra>
// kernel: transition_mlp_forward.1
= control target key start
LH: loop header
LB: loop body
LE: loop exit
PB: predicated region body
PF: predicated region fallthrough
CT: control target
= control target key end

     0   :  { %s976_s27 = smov 0   ;;  %s1079_s0 = inlined_call_operand.vmem [shape: f32[64,16], index: 0, kind: input, shape index: {}]   ;;  %s1080_s1 = inlined_call_operand.vmem [shape: s32[64,1], index: 1, kind: input, shape index: {}]   ;;  %s1081_s2 = inlined_call_operand.vmem [shape: bf16[16,32], index: 2, kind: input, shape index: {}]   ;;  %s1082_s3 = inlined_call_operand.vmem [shape: bf16[4,32], index: 3, kind: input, shape index: {}]   ;;  %s1083_s4 = inlined_call_operand.vmem [shape: bf16[32,32], index: 4, kind: input, shape index: {}]   ;;  %s1084_s5 = inlined_call_operand.vmem [shape: bf16[32,16], index: 5, kind: input, shape index: {}]   ;;  %s1085_s6 = inlined_call_operand.vmem [shape: f32[4,32], index: 6, kind: input, shape index: {}]   ;;  %s1086_s7 = inlined_call_operand.vmem [shape: f32[1,16], index: 7, kind: input, shape index: {}]   ;;  %s1087_s8 = inlined_call_operand.vmem [shape: f32[64,16], index: 8, kind: output, shape index: {}]  }
   0x1 LB: > { %s818_s28 = sadd.s32 4294967295, %s927_s27   ;;  %p822_p0 = scmp.ge.s32.totalorder %s927_s27, 1  ;;  %s927_s27 = sphi %s976_s27, %s18_s27  }
   0x2   : > { %p274_p1 = scmp.lt.s32.totalorder %s927_s27, 3 }
   0x4   : > { %p275_p2 = pnand %p822_p0, %p274_p1 }
   0x5   : > { %s823_s29 = sshll.u32 (!%p275_p2), %s818_s28, 2  ;;  %v929_v0 = vmov (!%p275_p2), 0   ;;  %v373_v5 = vld [vmem:[%s1082_s3] sm:$0x3] (!%p275_p2)  ;;  %vm381_vm0 = vcmask (!%p275_p2), 1041408   ;;  %v341_v8 = vlaneseq (!%p275_p2)  ;;  %vm374_vm5 = vcmask (!%p275_p2), 31744  }
   0x6   : > { %278 = sbr.rel (%p275_p2) target bundleno = 1006 (0x3ee), region = 52  ;;  %907 = vset.pattern.permute.xlu1 (!%p275_p2), %v929_v0  ;;  %906 = vset.pattern.permute.xlu0 (!%p275_p2), %v929_v0  ;;  %p314_p3 = scmp.lt.s32.totalorder (!%p275_p2), %s823_s29, 7  ;;  %v383_v6 = vsel (!%p275_p2), %vm381_vm0, %v373_v5, 0  ;;  %v908_v7 = vld [vmem:[%s1081_s2] sm:$0xff] (!%p275_p2)   ;;  %v930_v16 = vmov (!%p275_p2), 0.0   ;;  %vm440_vm6 = vcmask (!%p275_p2), 130048  }
   0x7   : > { %895 = vmatprep.subr.msk.bf16.mxu0 (!%p275_p2), %vm381_vm0, %v373_v5  ;;  %v342_v9 = vand.u32 (!%p275_p2), 127, %v341_v8  ;;  %v497_v27 = vshrl.u32 (!%p275_p2), %v341_v8, 7  ;;  %v909_v28 = vld [vmem:[%s1083_s4] sm:$0xff] (!%p275_p2)   ;;  %v910_v34 = vld [vmem:[%s1083_s4 + $0x8] sm:$0xff] (!%p275_p2)   ;;  %vm530_vm7 = vcmask (!%p275_p2), 261120  }
   0x8   : > { %864 = vmatpush3.bf16.msra.mxu0 (!%p275_p2), %v383_v6  ;;  %875 = vmatprep.subr.bf16.mxu1 (!%p275_p2), %v909_v28  ;;  %v340_v31 = vld [vmem:[%s1085_s6] sm:$0xf] (!%p275_p2) }
   0x9   : > { %869 = vmatprep.subr.bf16.mxu0 (!%p275_p2), %v908_v7  ;;  %v648_v29 = vsub.s32 (!%p275_p2), 2, %v497_v27  ;;  %v656_v30 = vsub.s32 (!%p275_p2), 3, %v497_v27  ;;  %876 = vmatpush3.bf16.msra.mxu1 (!%p275_p2), %v909_v28  ;;  %v516_v35 = vsub.s32 (!%p275_p2), 1, %v497_v27  ;;  %v498_v37 = vsub.s32 (!%p275_p2), 0, %v497_v27 }
   0xa   : > { %877 = vmatprep.subr.bf16.mxu1 (!%p275_p2), %v910_v34 }
   0xb   : > { %v1008_v32 = vrot.slane (!%p275_p2), %v340_v31, %v648_v29  ;;  %v1010_v33 = vrot.slane (!%p275_p2), %v340_v31, %v656_v30  ;;  %v517_v36 = vrot.slane (!%p275_p2), %v340_v31, %v516_v35  ;;  %v499_v38 = vrot.slane (!%p275_p2), %v340_v31, %v498_v37 }
   0xd   : > { %s1089_s29 = smov (!%p314_p3, %s823_s29), 7  ;;  %878 = vmatpush3.bf16.msra.mxu1 %v910_v34 }
   0xe   : > { %s984_s30 = sshll.u32 %s1089_s29, 3 }
   0xf   : > { %s323_s11 = scalar_lea.vmem %s1080_s1, %s984_s30  ;;  %s317_s18 = scalar_lea.vmem %s1079_s0, %s984_s30 }
  0x10   : > { %v338_v1 = vld [vmem:[%s323_s11 + $0x10] sm:$0xff]  ;;  %v336_v2 = vld [vmem:[%s323_s11] sm:$0xff]  ;;  %v339_v3 = vld [vmem:[%s323_s11 + $0x18] sm:$0xff]  ;;  %s329_s13 = scalar_lea.vmem %s1087_s8, %s984_s30 }
  0x11   : > { %350 = vperm.xlu1 %907, %v338_v1   ;;  %344 = vperm.xlu0 %906, %v336_v2   ;;  %v337_v4 = vld [vmem:[%s323_s11 + $0x8] sm:$0xff]  ;;  %v332_v14 = vld [vmem:[%s317_s18] sm:$0xff]  ;;  %v334_v24 = vld [vmem:[%s317_s18 + $0x10] sm:$0xff] }
  0x12   : > { %v333_v15 = vld [vmem:[%s317_s18 + $0x8] sm:$0xff]  ;;  %v335_v25 = vld [vmem:[%s317_s18 + $0x18] sm:$0xff] }
  0x13   : > { %v369_v23 = vpack.c.bf16 %v333_v15, %v332_v14  ;;  %v370_v26 = vpack.c.bf16 %v335_v25, %v334_v24 }
  0x15   : > { %353 = vperm.xlu1 %907, %v339_v3   ;;  %347 = vperm.xlu0 %906, %v337_v4  }
  0x90   : > { %v351_v10 = vpop.permute.xlu1 %350  ;;  %v345_v11 = vpop.permute.xlu0 %344 }
  0x91   : > { %vm357_vm1 = vcmp.eq.s32.totalorder %v342_v9, %v351_v10  ;;  %vm355_vm2 = vcmp.eq.s32.totalorder %v342_v9, %v345_v11  ;;  %v912_v10 = vld [vmem:[%s1084_s5 + $0x8] sm:$0xff]  }
  0x92   : > { %v831_v17 = vsel %vm357_vm1, 1.0, %v930_v16  ;;  %v829_v18 = vsel %vm355_vm2, 1.0, %v930_v16 }
  0x94   : > { %v354_v12 = vpop.permute.xlu1 %353  ;;  %v348_v13 = vpop.permute.xlu0 %347 }
  0x95   : > { %vm358_vm3 = vcmp.eq.s32.totalorder %v342_v9, %v354_v12  ;;  %vm356_vm4 = vcmp.eq.s32.totalorder %v342_v9, %v348_v13  ;;  %v911_v9 = vld [vmem:[%s1084_s5] sm:$0xff]  }
  0x96   : > { %v832_v19 = vsel %vm358_vm3, 1.0, %v930_v16  ;;  %v830_v20 = vsel %vm356_vm4, 1.0, %v930_v16  ;;  %883 = vmatprep.subr.bf16.mxu1 %v911_v9 }
  0x97   : > { %v368_v21 = vpack.c.bf16 %v832_v19, %v831_v17  ;;  %v367_v22 = vpack.c.bf16 %v830_v20, %v829_v18 }
  0x99   : > { %865 = vmatprep.mubr.msk.bf16.mxu0 %vm374_vm5, %v367_v22 }
  0x9a   : > { %866 = vmatmul.mubr.msk.bf16.vlgmr.msra.gmra.mrb[0].mxu0 %vm374_vm5, %v368_v21 }
  0x9b   : > { %870 = vmatpush3.bf16.msra.mxu0 %v908_v7  ;;  %871 = vmatprep.mubr.msk.bf16.mxu0 %vm440_vm6, %v369_v23 }
  0xa6   : > { %872 = vmatmul.mubr.msk.bf16.vlgmr.msra.gmra.mrb[0].mxu0 %vm440_vm6, %v370_v26 }
 0x179   : > { %v873_v39 = vpop.f32.mrb[0].mxu0 }
 0x17a   : > { %v502_v40 = vadd.f32 %v873_v39, %v499_v38  ;;  %v481_v41 = vpop.f32.mrb[1].mxu0 }
 0x17b   : > { %v500_v42 = vadd.f32 %v499_v38, %v481_v41  ;;  %v874_v43 = vpop.f32.mrb[2].mxu0 }
 0x17c   : > { %v503_v44 = vadd.f32 %v874_v43, %v499_v38  ;;  %v484_v45 = vpop.f32.mrb[3].mxu0  ;;  %v506_v47 = vmax.f32 %v502_v40, 0.0 }
 0x17d   : > { %v501_v46 = vadd.f32 %v499_v38, %v484_v45  ;;  %v504_v49 = vmax.f32 %v500_v42, 0.0 }
 0x17e   : > { %v507_v48 = vmax.f32 %v503_v44, 0.0 }
 0x17f   : > { %v505_v50 = vmax.f32 %v501_v46, 0.0 }
 0x180   : > { %v509_v51 = vpack.c.bf16 %v507_v48, %v506_v47 }
 0x181   : > { %v508_v52 = vpack.c.bf16 %v505_v50, %v504_v49 }
 0x183   : > { %879 = vmatprep.mubr.msk.bf16.mxu1 %vm530_vm7, %v508_v52 }
 0x184   : > { %880 = vmatmul.mubr.msk.bf16.vlgmr.msra.gmra.mrb[0].mxu1 %vm530_vm7, %v509_v51 }
 0x185   : > { %884 = vmatpush3.bf16.msra.mxu1 %v911_v9 }
 0x186   : > { %885 = vmatprep.subr.bf16.mxu1 %v912_v10 }
 0x189   : > { %886 = vmatpush3.bf16.msra.mxu1 %v912_v10 }
 0x257   : > { %v881_v53 = vpop.f32.mrb[0].mxu1 }
 0x258   : > { %v1017_v54 = vadd.f32 %v881_v53, %v517_v36  ;;  %v571_v55 = vpop.f32.mrb[1].mxu1 }
 0x259   : > { %v1019_v56 = vadd.f32 %v571_v55, %v517_v36  ;;  %v882_v57 = vpop.f32.mrb[2].mxu1 }
 0x25a   : > { %v1021_v58 = vadd.f32 %v882_v57, %v517_v36  ;;  %v574_v59 = vpop.f32.mrb[3].mxu1  ;;  %v592_v60 = vsel %vm530_vm7, %v1017_v54, 0.0  ;;  %v604_v2 = vmul.f32 %v1017_v54, %v1017_v54 }
 0x25b   : > { %v1025_v61 = vadd.f32 %v574_v59, %v517_v36  ;;  %593 = vadd.xlane.f32.xlu0 %v592_v60  ;;  %v602_v63 = vmul.f32 %v1019_v56, %v1019_v56  ;;  %v586_v0 = vsel %vm530_vm7, %v1019_v56, 0.0 }
 0x25c   : > { %v595_v3 = vsel %vm530_vm7, %v1021_v58, 0.0  ;;  %v612_v5 = vsel %vm530_vm7, %v604_v2, 0.0  ;;  %v605_v7 = vmul.f32 %v1021_v58, %v1021_v58 }
 0x25d   : > { %v589_v62 = vsel %vm530_vm7, %v1025_v61, 0.0  ;;  %v606_v1 = vsel %vm530_vm7, %v602_v63, 0.0  ;;  %v603_v4 = vmul.f32 %v1025_v61, %v1025_v61 }
 0x25e   : > { %590 = vadd.xlane.f32.xlu1 %v589_v62  ;;  %v615_v8 = vsel %vm530_vm7, %v605_v7, 0.0 }
 0x25f   : > { %587 = vadd.xlane.f32.xlu0 %v586_v0  ;;  %v609_v6 = vsel %vm530_vm7, %v603_v4, 0.0 }
 0x262   : > { %607 = vadd.xlane.f32.xlu1 %v606_v1 }
 0x263   : > { %596 = vadd.xlane.f32.xlu0 %v595_v3  ;;  %v842_v3 = vld [vmem:[%s1086_s7] ss:$0 sm:$0xff] }
 0x266   : > { %613 = vadd.xlane.f32.xlu1 %v612_v5 }
 0x267   : > { %610 = vadd.xlane.f32.xlu0 %v609_v6 }
 0x26b   : > { %616 = vadd.xlane.f32.xlu0 %v615_v8 }
 0x2e8   : > { %v594_v11 = vpop.xlane.xlu0 %593 }
 0x2e9   : > { %v600_v17 = vmul.f32 0.03125, %v594_v11 }
 0x2eb   : > { %v591_v12 = vpop.xlane.xlu1 %590  ;;  %v624_v23 = vmul.f32 %v600_v17, %v600_v17  ;;  %v632_v44 = vsub.f32 %v1017_v54, %v600_v17 }
 0x2ec   : > { %v588_v13 = vpop.xlane.xlu0 %587  ;;  %v599_v20 = vmul.f32 0.03125, %v591_v12 }
 0x2ed   : > { %v598_v14 = vmul.f32 0.03125, %v588_v13 }
 0x2ee   : > { %v623_v27 = vmul.f32 %v599_v20, %v599_v20  ;;  %v631_v47 = vsub.f32 %v1025_v61, %v599_v20 }
 0x2ef   : > { %v622_v15 = vmul.f32 %v598_v14, %v598_v14  ;;  %v608_v16 = vpop.xlane.xlu1 %607  ;;  %v630_v41 = vsub.f32 %v1019_v56, %v598_v14 }
 0x2f0   : > { %v618_v18 = vmul.f32 0.03125, %v608_v16  ;;  %v597_v19 = vpop.xlane.xlu0 %596 }
 0x2f1   : > { %v601_v28 = vmul.f32 0.03125, %v597_v19 }
 0x2f2   : > { %v626_v21 = vsub.f32 %v618_v18, %v622_v15 }
 0x2f3   : > { %v614_v22 = vpop.xlane.xlu1 %613  ;;  %v625_v36 = vmul.f32 %v601_v28, %v601_v28  ;;  %v633_v53 = vsub.f32 %v1021_v58, %v601_v28 }
 0x2f4   : > { %v634_v24 = vadd.f32 1e-05, %v626_v21  ;;  %v620_v25 = vmul.f32 0.03125, %v614_v22  ;;  %v611_v26 = vpop.xlane.xlu0 %610 }
 0x2f5   : > { %v619_v29 = vmul.f32 0.03125, %v611_v26 }
 0x2f6   : > { %913 = vrsqrt.f32 %v634_v24  ;;  %v628_v30 = vsub.f32 %v620_v25, %v624_v23 }
 0x2f7   : > { %v627_v31 = vsub.f32 %v619_v29, %v623_v27 }
 0x2f8   : > { %v636_v34 = vadd.f32 1e-05, %v628_v30  ;;  %v617_v35 = vpop.xlane.xlu0 %616 }
 0x2f9   : > { %v635_v37 = vadd.f32 1e-05, %v627_v31  ;;  %v621_v38 = vmul.f32 0.03125, %v617_v35 }
 0x2fa   : > { %915 = vrsqrt.f32 %v636_v34 }
 0x2fb   : > { %917 = vrsqrt.f32 %v635_v37  ;;  %v629_v39 = vsub.f32 %v621_v38, %v625_v36 }
 0x2fd   : > { %v637_v40 = vadd.f32 1e-05, %v629_v39 }
 0x2ff   : > { %919 = vrsqrt.f32 %v637_v40 }
 0x300   : > { %v914_v42 = vpop.eup %913 }
 0x301   : > { %v642_v43 = vmul.f32 %v914_v42, %v630_v41 }
 0x303   : > { %v650_v45 = vmul.f32 %v1008_v32, %v642_v43 }
 0x304   : > { %v916_v46 = vpop.eup %915 }
 0x305   : > { %v918_v48 = vpop.eup %917  ;;  %v644_v49 = vmul.f32 %v916_v46, %v632_v44  ;;  %v658_v50 = vadd.f32 %v1010_v33, %v650_v45 }
 0x306   : > { %v643_v51 = vmul.f32 %v918_v48, %v631_v47 }
 0x307   : > { %v652_v52 = vmul.f32 %v1008_v32, %v644_v49  ;;  %v662_v61 = vmax.f32 %v658_v50, 0.0 }
 0x308   : > { %v651_v55 = vmul.f32 %v1008_v32, %v643_v51 }
 0x309   : > { %v920_v56 = vpop.eup %919  ;;  %v660_v54 = vadd.f32 %v1010_v33, %v652_v52 }
 0x30a   : > { %v645_v57 = vmul.f32 %v920_v56, %v633_v53  ;;  %v659_v59 = vadd.f32 %v1010_v33, %v651_v55 }
 0x30b   : > { %v664_v1 = vmax.f32 %v660_v54, 0.0 }
 0x30c   : > { %v653_v60 = vmul.f32 %v1008_v32, %v645_v57  ;;  %v663_v62 = vmax.f32 %v659_v59, 0.0 }
 0x30e   : > { %v666_v63 = vpack.c.bf16 %v663_v62, %v662_v61  ;;  %v661_v0 = vadd.f32 %v1010_v33, %v653_v60 }
 0x310   : > { %887 = vmatprep.mubr.msk.bf16.mxu1 %vm530_vm7, %v666_v63  ;;  %v665_v58 = vmax.f32 %v661_v0, 0.0 }
 0x312   : > { %v667_v2 = vpack.c.bf16 %v665_v58, %v664_v1 }
 0x314   : > { %888 = vmatmul.mubr.msk.bf16.vlgmr.msra.gmra.mrb[4].mxu1 %vm530_vm7, %v667_v2 }
 0x3e7   : > { %v889_v4 = vpop.f32.mrb[4].mxu1 }
 0x3e8   : > { %v731_v32 = vpop.f32.mrb[5].mxu1  ;;  %v740_v8 = vadd.f32 %v889_v4, %v842_v3 }
 0x3e9   : > { %v732_v5 = vadd.f32 %v842_v3, %v731_v32  ;;  %v890_v6 = vpop.f32.mrb[6].mxu1 }
 0x3ea   : > { %v734_v33 = vpop.f32.mrb[7].mxu1  ;;  %v743_v9 = vadd.f32 %v890_v6, %v842_v3  ;;  %748 = vst.msk [vmem:[%s329_s13 + $0x10] sm:$0xff] %vm440_vm6, %v740_v8 }
 0x3eb   : > { %746 = vst.msk [vmem:[%s329_s13] sm:$0xff] %vm440_vm6, %v732_v5  ;;  %v735_v7 = vadd.f32 %v842_v3, %v734_v33 }
 0x3ec   : > { %749 = vst.msk [vmem:[%s329_s13 + $0x18] sm:$0xff] %vm440_vm6, %v743_v9 }
 0x3ed   : > { %747 = vst.msk [vmem:[%s329_s13 + $0x8] sm:$0xff] %vm440_vm6, %v735_v7 }
 0x3ee PF: > { %s18_s27 = sadd.s32 1, %s927_s27  }
 0x3ef   : > { %p15_p4 = scmp.ge.s32.totalorder %s18_s27, 4  }
 0x3f1   :  { %17 = sbr.rel (!%p15_p4) target bundleno = 1 (0x1), region = 85 }

</bundles_post_ra>
